<compile_context>
chip_gen: v5e
topology: v5e:2x2
jax: 0.10.0
libtpu: 0.0.40
codegen_flags: <defaults>
</compile_context>

<pallas_src>
import jax
import jax.numpy as jnp
from jax.experimental import pallas as pl
from jax.experimental.pallas import tpu as pltpu

# Problem sizes (consistent with the module's Conv2d(3, 6, 3) forward).
N, C_IN, H, W = 2, 3, 16, 16
C_OUT, KH, KW = 6, 3, 3
OH, OW = H - KH + 1, W - KW + 1            # stride=1, padding=0 -> 14, 14

K_DIM = C_IN * KH * KW                     # 27  (contraction dim)
M_DIM = N * OH * OW                        # 392 (lane / output-pixel dim)

# Padded tile sizes: K padded to a sublane multiple (32), lane dim padded to a
# multiple of 128 (392 -> 512) so the matmul result is stored with unmasked,
# lane-dense vst's and the MXU sees aligned operands on all generations.
K_PAD = 32
M_PAD = 512
CO_PAD = 8                                 # 6 -> 8 (sublane multiple)


def conv_mm_kernel(p_ref, w_ref, b_ref, o_ref):
    """p_ref: (K_PAD, M_PAD) im2col'd input, VMEM.
    w_ref: (CO_PAD, K_PAD) weights, VMEM.
    b_ref: (CO_PAD, 1) bias, VMEM.
    o_ref: (CO_PAD, M_PAD) lane-dense output, VMEM.

    One MXU matmul + one broadcast bias add + one lane-dense store.
    """
    o_ref[...] = (
        jnp.dot(w_ref[...], p_ref[...], preferred_element_type=jnp.float32)
        + b_ref[...]
    )


def conv2d_pallas(x, weight, bias):
    """x: (N, C_IN, H, W) f32; weight: (C_OUT, C_IN, KH, KW) f32; bias: (C_OUT,) f32.

    Returns (N, C_OUT, OH, OW) f32, matching PyTorch's Conv2d(3, 6, 3) forward.
    """
    x = x.astype(jnp.float32)
    weight = weight.astype(jnp.float32)
    bias = bias.astype(jnp.float32)

    # --- wrapper-side im2col (layout plumbing, stays out of the kernel) -----------
    # Column index order (ci, kh, kw) matches weight.reshape(C_OUT, C_IN*KH*KW).
    cols = []
    for ci in range(C_IN):
        for kh in range(KH):
            for kw in range(KW):
                cols.append(x[:, ci, kh:kh + OH, kw:kw + OW].reshape(-1))  # (N*OH*OW,)
    patches = jnp.stack(cols, axis=0)                                      # (27, 392)
    patches = jnp.pad(patches, ((0, K_PAD - K_DIM), (0, M_PAD - M_DIM)))   # (32, 512)

    w_mat = weight.reshape(C_OUT, K_DIM)                                   # (6, 27)
    w_mat = jnp.pad(w_mat, ((0, CO_PAD - C_OUT), (0, K_PAD - K_DIM)))      # (8, 32)

    b_col = jnp.pad(bias, (0, CO_PAD - C_OUT)).reshape(CO_PAD, 1)          # (8, 1)

    out_padded = pl.pallas_call(
        conv_mm_kernel,
        out_shape=jax.ShapeDtypeStruct((CO_PAD, M_PAD), jnp.float32),
        in_specs=[
            pl.BlockSpec(memory_space=pltpu.MemorySpace.VMEM),  # im2col patches
            pl.BlockSpec(memory_space=pltpu.MemorySpace.VMEM),  # weight matrix
            pl.BlockSpec(memory_space=pltpu.MemorySpace.VMEM),  # bias column
        ],
        out_specs=pl.BlockSpec(memory_space=pltpu.MemorySpace.VMEM),
    )(patches, w_mat, b_col)

    # --- wrapper-side un-pad + NCHW restore ----------------------------------------
    out = out_padded[:C_OUT, :M_DIM]                       # (6, N*OH*OW)
    out = out.reshape(C_OUT, N, OH, OW).transpose(1, 0, 2, 3)  # (N, 6, OH, OW)
    return out


if __name__ == "__main__":
    key = jax.random.PRNGKey(0)
    kx, kw, kb = jax.random.split(key, 3)

    # Deterministic parameter init (PyTorch-style uniform(-1/sqrt(fan_in), 1/sqrt(fan_in))).
    fan_in = C_IN * KH * KW
    bound = 1.0 / jnp.sqrt(jnp.float32(fan_in))
    weight = jax.random.uniform(kw, (C_OUT, C_IN, KH, KW), jnp.float32, -bound, bound)
    bias = jax.random.uniform(kb, (C_OUT,), jnp.float32, -bound, bound)

    x = jax.random.normal(kx, (N, C_IN, H, W), jnp.float32)

    out = conv2d_pallas(x, weight, bias)
    out = jax.block_until_ready(out)

    # Reference check against XLA's conv (NCHW / OIHW, VALID padding) + bias.
    ref = jax.lax.conv_general_dilated(
        x, weight, window_strides=(1, 1), padding="VALID",
        dimension_numbers=("NCHW", "OIHW", "NCHW"),
    ) + bias.reshape(1, C_OUT, 1, 1)

    assert out.shape == (N, C_OUT, OH, OW)
    assert jnp.allclose(out, ref, atol=1e-4, rtol=1e-4)

    print("KERNEL_OK")
</pallas_src>

<mosaic_0001>
module attributes {stable_mosaic.version = 11 : i64} {
  func.func @conv_mm_kernel(%arg0: memref<32x512xf32, #tpu.memory_space<vmem>>, %arg1: memref<8x32xf32, #tpu.memory_space<vmem>>, %arg2: memref<8x1xf32, #tpu.memory_space<vmem>>, %arg3: memref<8x512xf32, #tpu.memory_space<vmem>>) attributes {dimension_semantics = [], scalar_prefetch = 0 : i64, scratch_operands = 0 : i64, tpu.core_type = #tpu.core_type<tc>} {
    %c0 = arith.constant 0 : index
    %c0_0 = arith.constant 0 : index
    %0 = vector.load %arg1[%c0, %c0_0] : memref<8x32xf32, #tpu.memory_space<vmem>>, vector<8x32xf32>
    %c0_1 = arith.constant 0 : index
    %c0_2 = arith.constant 0 : index
    %1 = vector.load %arg0[%c0_1, %c0_2] : memref<32x512xf32, #tpu.memory_space<vmem>>, vector<32x512xf32>
    %cst = arith.constant dense<0.000000e+00> : vector<8x512xf32>
    %2 = tpu.matmul %0, %1, %cst {dimension_numbers = #tpu.dot_dimension_numbers<[1], [0], [0], [1], [0, 0, 1, 1], [], []>} : vector<8x32xf32>, vector<32x512xf32>, vector<8x512xf32> -> vector<8x512xf32>
    %c0_3 = arith.constant 0 : index
    %c0_4 = arith.constant 0 : index
    %3 = vector.load %arg2[%c0_3, %c0_4] : memref<8x1xf32, #tpu.memory_space<vmem>>, vector<8x1xf32>
    %4 = vector.broadcast %3 : vector<8x1xf32> to vector<8x512xf32>
    %5 = arith.addf %2, %4 : vector<8x512xf32>
    %c0_5 = arith.constant 0 : index
    %c0_6 = arith.constant 0 : index
    %6 = vector.load %arg3[%c0_5, %c0_6] : memref<8x512xf32, #tpu.memory_space<vmem>>, vector<8x512xf32>
    tpu.vector_store %arg3[%c0_5, %c0_6], %5 {strides = array<i32>} : memref<8x512xf32, #tpu.memory_space<vmem>>, vector<8x512xf32>,
    return
  }
}

</mosaic_0001>

<bundles_post_ra>
// kernel: tpu_custom_call.1
= control target key start
LH: loop header
LB: loop body
LE: loop exit
PB: predicated region body
PF: predicated region fallthrough
CT: control target
= control target key end

     0   :  { %8 = vsyncpa [#allocation3], 0  ;;  %s262_s0 = inlined_call_operand.hbm [shape: f32[32,512], index: 0, kind: input, shape index: {}]   ;;  %s263_s1 = inlined_call_operand.vmem [shape: f32[8,32], index: 1, kind: input, shape index: {}]   ;;  %s264_s2 = inlined_call_operand.vmem [shape: f32[8,1], index: 2, kind: input, shape index: {}]   ;;  %s265_s3 = inlined_call_operand.hbm [shape: f32[8,512], index: 3, kind: output, shape index: {}]  }
   0x1   :  { %9 = vsyncpa [#allocation4], 0  ;;  %s14_s14 = sshll.u32 %s262_s0, 4  ;;  %s221_s15 = smov [#allocation2]   ;;  %s15_s14 = int_to_ptr.hbm [resolvable:$true] %s14_s14 }
   0x2   :  { %s16_s16 = sshll.u32 %s221_s15, 4  ;;  %s222_s17 = smov 512   ;;  %s17_s16 = int_to_ptr.vmem [resolvable:$true] %s16_s16 }
   0x3   :  { %s223_s18 = smov 32  }
   0x4   :  { %22 = dma.hbm_to_vmem [thread:$0]  %s15_s14, 2048, %s17_s16, [#allocation3], %s222_s17, %s222_s17, %s223_s18  }
   0x5   :  { %217 = dma.done.wait [#allocation3], 2048  }
   0x6   :  { %218 = vsyncadd [#allocation3], 4294965248  ;;  %v224_v0 = vmov 0   ;;  %v46_v1 = vld [vmem:[#allocation2 + $0x70] sm:$0xff]  ;;  %v47_v2 = vld [vmem:[#allocation2 + $0x78] sm:$0xff]  ;;  %vm54_vm0 = vcmask 261120  }
   0x7   :  { %168 = vset.pattern.permute.xlu0 %v224_v0  ;;  %v42_v3 = vld [vmem:[#allocation2 + $0x50] sm:$0xff]  ;;  %110 = vmatpush.msra.mxu2 %v46_v1  ;;  %v43_v4 = vld [vmem:[#allocation2 + $0x58] sm:$0xff]  ;;  %v44_v7 = vld [vmem:[#allocation2 + $0x60] sm:$0xff]  ;;  %s149_s24 = sshll.u32 %s265_s3, 4  ;;  %s150_s24 = int_to_ptr.hbm [resolvable:$true] %s149_s24 }
   0x8   :  { %130 = vmatpush.msra.mxu3 %v47_v2  ;;  %v38_v5 = vld [vmem:[#allocation2 + $0x30] sm:$0xff]  ;;  %v39_v6 = vld [vmem:[#allocation2 + $0x38] sm:$0xff]  ;;  %v45_v8 = vld [vmem:[#allocation2 + $0x68] sm:$0xff]  ;;  %70 = vmatpush.msra.mxu0 %v44_v7 }
   0x9   :  { %111 = vmatpush.msra.mxu2 %v42_v3  ;;  %v40_v9 = vld [vmem:[#allocation2 + $0x40] sm:$0xff]  ;;  %90 = vmatpush.msra.mxu1 %v45_v8  ;;  %v34_v10 = vld [vmem:[#allocation2 + $0x10] sm:$0xff]  ;;  %v35_v11 = vld [vmem:[#allocation2 + $0x18] sm:$0xff] }
   0xa   :  { %131 = vmatpush.msra.mxu3 %v43_v4  ;;  %v41_v12 = vld [vmem:[#allocation2 + $0x48] sm:$0xff]  ;;  %v31_v13 = vld [vmem:[%s263_s1] sm:$0xff]  ;;  %71 = vmatpush.msra.mxu0 %v40_v9  ;;  %s225_s1 = smov [#allocation5]  }
   0xb   :  { %112 = vmatpush.msra.mxu2 %v38_v5  ;;  %91 = vmatpush.msra.mxu1 %v41_v12  ;;  %v36_v14 = vld [vmem:[#allocation2 + $0x20] sm:$0xff]  ;;  %v37_v15 = vld [vmem:[#allocation2 + $0x28] sm:$0xff] }
   0xc   :  { %132 = vmatpush.msra.mxu3 %v39_v6  ;;  %v48_v16 = vld [vmem:[%s264_s2] sm:$0xff]  ;;  %v33_v18 = vld [vmem:[#allocation2 + $0x8] sm:$0xff]  ;;  %72 = vmatpush.msra.mxu0 %v36_v14  ;;  %s147_s2 = sshll.u32 %s225_s1, 4  ;;  %s148_s2 = int_to_ptr.vmem [resolvable:$true] %s147_s2 }
   0xd   :  { %113 = vmatpush.msra.mxu2 %v34_v10  ;;  %v32_v17 = vld [vmem:[#allocation2] sm:$0xff]  ;;  %92 = vmatpush.msra.mxu1 %v37_v15 }
   0xe   :  { %133 = vmatpush.msra.mxu3 %v35_v11  ;;  %161 = vmatmul.msk.f32.vlgmr.msra.gmra.mxu2 %vm54_vm0, %v31_v13 }
   0xf   :  { %162 = vmatmul.msk.f32.vlgmr.msra.gmra.mxu3 %vm54_vm0, %v31_v13  ;;  %51 = vperm.xlu0 %168, %v48_v16  }
  0x10   :  { %73 = vmatpush.msra.mxu0 %v32_v17  ;;  %93 = vmatpush.msra.mxu1 %v33_v18 }
  0x11   :  { %159 = vmatmul.msk.f32.vlgmr.msra.gmra.mxu0 %vm54_vm0, %v31_v13  ;;  %160 = vmatmul.msk.f32.vlgmr.msra.gmra.mxu1 %vm54_vm0, %v31_v13 }
  0x81   :  { %v52_v19 = vpop.permute.xlu0 %51 }
  0x8e   :  { %v75_v20 = vpop.f32.mrf.mxu0  ;;  %v95_v21 = vpop.f32.mrf.mxu1 }
  0x8f   :  { %v76_v22 = vadd.f32 %v75_v20, %v52_v19  ;;  %v96_v23 = vadd.f32 %v95_v21, %v52_v19 }
  0x91   :  { %v115_v24 = vpop.f32.mrf.mxu2  ;;  %138 = vst [vmem:[#allocation5] sm:$0xff] %v76_v22 }
  0x92   :  { %v135_v25 = vpop.f32.mrf.mxu3  ;;  %v116_v26 = vadd.f32 %v115_v24, %v52_v19  ;;  %139 = vst [vmem:[#allocation5 + $0x8] sm:$0xff] %v96_v23 }
  0x93   :  { %v136_v27 = vadd.f32 %v135_v25, %v52_v19 }
  0x94   :  { %140 = vst [vmem:[#allocation5 + $0x10] sm:$0xff] %v116_v26 }
  0x95   :  { %141 = vst [vmem:[#allocation5 + $0x18] sm:$0xff] %v136_v27 }
  0x96   :  { %152 = dma.vmem_to_hbm [thread:$0]  %s148_s2, 512, %s150_s24, [#allocation4]  }
  0x97   :  { %219 = dma.done.wait [#allocation4], 512  }
  0x98   :  { %220 = vsyncadd [#allocation4], 4294966784 }
  0x99   :  { %157 = vsyncpa [#allocation3], 1 }
  0x9a   :  { %158 = vsyncpa [#allocation4], 1 }

</bundles_post_ra>
